<compile_context>
chip_gen: v7x
topology: tpu7x:2x2x1
jax: 0.10.0
libtpu: 0.0.40
codegen_flags: <defaults>
</compile_context>

<pallas_src>
import functools

import numpy as np
import jax
import jax.numpy as jnp
from jax.experimental import pallas as pl
from jax.experimental.pallas import tpu as pltpu


# ----------------------------------------------------------------------------
# Kernel
# ----------------------------------------------------------------------------
def unet1d_kernel(Bt, L, Lp, cd,
                  x_ref, t_ref, edge_ref,
                  ew1_ref, eb1_ref, ew2_ref, eb2_ref,
                  tw1_ref, tb1_ref, tw2_ref, tb2_ref,
                  dw1_ref, db1_ref, dw2_ref, db2_ref,
                  out_ref):
    M = Bt * Lp
    x = x_ref[0]                          # (1, M)  f32, batch*length on lanes
    tT = t_ref[0]                         # (32, Bt) f32, one column per batch

    mneg = edge_ref[0:1, :]               # (1, M): 0 where l == 0     (kills -1 tap)
    mpos = edge_ref[1:2, :]               # (1, M): 0 where l == L - 1 (kills +1 tap)

    def taps(v):                          # v: (C, M) f32
        vm1 = pltpu.roll(v, shift=1, axis=1) * mneg        # v[:, m-1], edge-masked
        vp1 = pltpu.roll(v, shift=M - 1, axis=1) * mpos    # v[:, m+1], edge-masked
        return vm1, vp1

    def conv(v, w_ref, b_ref):
        # One fused MXU matmul per conv layer: W(Cout, 3*Cin) @ [v_m1; v; v_p1].
        vm1, vp1 = taps(v)
        xs = jnp.concatenate([vm1, v, vp1], axis=0).astype(cd)   # (3*Cin, M)
        out = jnp.dot(w_ref[...], xs, preferred_element_type=jnp.float32)
        return out + b_ref[...]                                  # + (Cout, 1) bias

    # ---- encoder: Conv1d(1,16,k3,p1)+ReLU, Conv1d(16,32,k3,p1)+ReLU ----
    h = jnp.maximum(conv(x, ew1_ref, eb1_ref), 0.0)              # (16, M)
    h = jnp.maximum(conv(h, ew2_ref, eb2_ref), 0.0)              # (32, M)

    # ---- time embedding: Linear(32,32) -> ReLU -> Linear(32,32) ----
    # Weights kept in torch (out, in) layout; columns of tT are batch elements.
    te = jnp.dot(tw1_ref[...], tT.astype(cd),
                 preferred_element_type=jnp.float32) + tb1_ref[...]
    te = jnp.maximum(te, 0.0)
    te = jnp.dot(tw2_ref[...], te.astype(cd),
                 preferred_element_type=jnp.float32) + tb2_ref[...]   # (32, Bt)

    # x = x + t_emb.unsqueeze(-1): per-batch lane splat on the VPU (no selector
    # matmul, no (N, Bt) table).
    if Bt == 1:
        h = h + te
    else:
        te_b = jnp.concatenate(
            [jnp.broadcast_to(te[:, b:b + 1], (32, Lp)) for b in range(Bt)],
            axis=1)                                              # (32, M)
        h = h + te_b

    # ---- decoder: Conv1d(32,16,k3,p1)+ReLU, Conv1d(16,1,k3,p1), Tanh ----
    h = jnp.maximum(conv(h, dw1_ref, db1_ref), 0.0)              # (16, M)
    d = conv(h, dw2_ref, db2_ref)                                # (1, M) lane-dense
    out_ref[0] = jnp.tanh(d).astype(out_ref.dtype)


# ----------------------------------------------------------------------------
# Wrapper
# ----------------------------------------------------------------------------
_LANE_FOLD_CAP = 8192      # max lanes (Bt * Lp) folded into one grid step


def _round_up(v, m):
    return (v + m - 1) // m * m


def _tensorcores_per_chip():
    try:
        kind = jax.devices()[0].device_kind.lower()
    except Exception:
        return 1
    return 2 if ("v7" in kind or "v4" in kind or "v5p" in kind) else 1


def _choose_batch_tile(B, Lp):
    bt = max(1, min(B, _LANE_FOLD_CAP // Lp))
    gb = int(pl.cdiv(B, bt))
    # Only force >=2 grid steps on multi-TensorCore chips (v7x / megacore);
    # on single-TC v5e/v6e extra steps are pure pipeline overhead.
    if _tensorcores_per_chip() >= 2 and gb == 1 and B > 1:
        bt = int(pl.cdiv(B, 2))
        gb = int(pl.cdiv(B, bt))
    return int(bt), int(gb)


def _stack_conv_w(w, cd):
    # torch (Cout, Cin, K=3) -> (Cout, 3*Cin); row order [m1 taps | center | p1 taps].
    co, ci, k = w.shape
    return jnp.transpose(w, (0, 2, 1)).reshape(co, k * ci).astype(cd)


@functools.partial(jax.jit, static_argnames=("compute_dtype",))
def unet1d_forward(x_ncl, t, params, compute_dtype=jnp.float32):
    """x_ncl: (B, 1, L) f32 (PyTorch NCL), t: (B, 32) f32 -> (B, 1, L) f32."""
    B, _, L = x_ncl.shape
    Lp = _round_up(L, 128)                       # lane-dense length
    Bt, Gb = _choose_batch_tile(B, Lp)
    Bp, M = Bt * Gb, Bt * Lp
    cd = compute_dtype

    # NCL -> kernel layout: pure reshape / pad (channel count is 1).
    x2 = jnp.pad(x_ncl.reshape(B, L).astype(jnp.float32),
                 ((0, Bp - B), (0, Lp - L)))
    x3 = x2.reshape(Gb, 1, M)                                    # (Gb, 1, Bt*Lp)
    t3 = jnp.pad(t.astype(jnp.float32), ((0, Bp - B), (0, 0)))
    t3 = jnp.transpose(t3.reshape(Gb, Bt, 32), (0, 2, 1))        # (Gb, 32, Bt)

    # Constant per-position edge masks: kill the -1 tap at l==0 and the +1 tap
    # at l==L-1 so rolls never leak across length padding or batch folds.
    lpos = np.arange(M) % Lp
    edge = np.stack([(lpos != 0), (lpos != L - 1)], axis=0).astype(np.float32)  # (2, M)

    weights = [
        _stack_conv_w(params["enc1_w"], cd), params["enc1_b"].reshape(-1, 1),
        _stack_conv_w(params["enc2_w"], cd), params["enc2_b"].reshape(-1, 1),
        params["t1_w"].astype(cd),           params["t1_b"].reshape(-1, 1),
        params["t2_w"].astype(cd),           params["t2_b"].reshape(-1, 1),
        _stack_conv_w(params["dec1_w"], cd), params["dec1_b"].reshape(-1, 1),
        _stack_conv_w(params["dec2_w"], cd), params["dec2_b"].reshape(-1, 1),
    ]

    def _const_spec(a):
        nd = a.ndim
        return pl.BlockSpec(a.shape, lambda g, _nd=nd: (0,) * _nd)

    in_specs = (
        [pl.BlockSpec((1, 1, M), lambda g: (g, 0, 0)),     # x tile (lanes = Bt*Lp)
         pl.BlockSpec((1, 32, Bt), lambda g: (g, 0, 0)),   # t tile
         _const_spec(edge)]
        + [_const_spec(w) for w in weights]
    )

    out = pl.pallas_call(
        functools.partial(unet1d_kernel, Bt, L, Lp, cd),
        grid=(Gb,),
        in_specs=in_specs,
        out_specs=pl.BlockSpec((1, 1, M), lambda g: (g, 0, 0)),   # lane-dense slab
        out_shape=jax.ShapeDtypeStruct((Gb, 1, M), jnp.float32),
        compiler_params=pltpu.CompilerParams(
            dimension_semantics=("parallel",)),
    )(x3, t3, edge, *weights)

    out = out.reshape(Bp, Lp)[:B, :L]            # drop batch / length padding
    return out.reshape(B, 1, L)


# ----------------------------------------------------------------------------
# Deterministic parameter construction (PyTorch layouts:
#   conv (Cout, Cin, 3); linear (out, in); bias (C,))
# ----------------------------------------------------------------------------
def make_params(key):
    ks = jax.random.split(key, 12)

    def conv_w(k, cout, cin):
        return jax.random.normal(k, (cout, cin, 3), jnp.float32) / jnp.sqrt(3.0 * cin)

    def lin_w(k, cout, cin):
        return jax.random.normal(k, (cout, cin), jnp.float32) / jnp.sqrt(float(cin))

    def bias(k, c):
        return jax.random.normal(k, (c,), jnp.float32) * 0.05

    return {
        "enc1_w": conv_w(ks[0], 16, 1),   "enc1_b": bias(ks[1], 16),
        "enc2_w": conv_w(ks[2], 32, 16),  "enc2_b": bias(ks[3], 32),
        "t1_w":   lin_w(ks[4], 32, 32),   "t1_b":   bias(ks[5], 32),
        "t2_w":   lin_w(ks[6], 32, 32),   "t2_b":   bias(ks[7], 32),
        "dec1_w": conv_w(ks[8], 16, 32),  "dec1_b": bias(ks[9], 16),
        "dec2_w": conv_w(ks[10], 1, 16),  "dec2_b": bias(ks[11], 1),
    }


# ----------------------------------------------------------------------------
# Pure-JAX reference (same math, plain jnp) for correctness checking
# ----------------------------------------------------------------------------
def ref_forward(x_ncl, t, p):
    def conv1d(x_cl, w, b):  # x: (Cin, L), w: (Cout, Cin, 3), b: (Cout,)
        L = x_cl.shape[1]
        xp = jnp.pad(x_cl, ((0, 0), (1, 1)))
        out = (jnp.einsum("oc,cl->ol", w[:, :, 0], xp[:, 0:L])
               + jnp.einsum("oc,cl->ol", w[:, :, 1], xp[:, 1:L + 1])
               + jnp.einsum("oc,cl->ol", w[:, :, 2], xp[:, 2:L + 2]))
        return out + b[:, None]

    outs = []
    for i in range(x_ncl.shape[0]):
        h = jnp.maximum(conv1d(x_ncl[i], p["enc1_w"], p["enc1_b"]), 0.0)
        h = jnp.maximum(conv1d(h, p["enc2_w"], p["enc2_b"]), 0.0)
        te = jnp.maximum(t[i] @ p["t1_w"].T + p["t1_b"], 0.0)
        te = te @ p["t2_w"].T + p["t2_b"]                       # (32,)
        h = h + te[:, None]
        h = jnp.maximum(conv1d(h, p["dec1_w"], p["dec1_b"]), 0.0)
        h = jnp.tanh(conv1d(h, p["dec2_w"], p["dec2_b"]))
        outs.append(h)                                          # (1, L)
    return jnp.stack(outs, axis=0)                              # (B, 1, L)


# ----------------------------------------------------------------------------
if __name__ == "__main__":
    B, L = 2, 16
    key = jax.random.PRNGKey(0)
    kx, kt, kp = jax.random.split(key, 3)

    x = jax.random.normal(kx, (B, 1, L), jnp.float32)           # (B, 1, L) NCL
    t = jax.random.normal(kt, (B, 32), jnp.float32)             # (B, 32)
    params = make_params(kp)
    ref = ref_forward(x, t, params)

    # f32 MXU-operand path: exact check.
    out = jax.block_until_ready(unet1d_forward(x, t, params))
    assert out.shape == (B, 1, L), out.shape
    assert jnp.allclose(out, ref, atol=1e-4, rtol=1e-4), (
        float(jnp.max(jnp.abs(out - ref))))

    # bf16 MXU-operand path (f32 accumulation): loosened tolerance.
    out_bf = jax.block_until_ready(
        unet1d_forward(x, t, params, compute_dtype=jnp.bfloat16))
    assert jnp.allclose(out_bf, ref, atol=3e-2, rtol=3e-2), (
        float(jnp.max(jnp.abs(out_bf - ref))))

    # Second shape: non-multiple-of-128 length (lane padding) and odd batch.
    B2, L2 = 3, 200
    x2 = jax.random.normal(jax.random.PRNGKey(1), (B2, 1, L2), jnp.float32)
    t2 = jax.random.normal(jax.random.PRNGKey(2), (B2, 32), jnp.float32)
    out2 = jax.block_until_ready(unet1d_forward(x2, t2, params))
    ref2 = ref_forward(x2, t2, params)
    assert out2.shape == (B2, 1, L2), out2.shape
    assert jnp.allclose(out2, ref2, atol=1e-4, rtol=1e-4), (
        float(jnp.max(jnp.abs(out2 - ref2))))

    print("KERNEL_OK")
</pallas_src>

<mosaic_0001>
module attributes {stable_mosaic.version = 11 : i64} {
  func.func @unet1d_kernel(%arg0: i32, %arg1: memref<1x1x256xf32, #tpu.memory_space<vmem>>, %arg2: memref<1x32x2xf32, #tpu.memory_space<vmem>>, %arg3: memref<2x256xf32, #tpu.memory_space<vmem>>, %arg4: memref<16x3xf32, #tpu.memory_space<vmem>>, %arg5: memref<16x1xf32, #tpu.memory_space<vmem>>, %arg6: memref<32x48xf32, #tpu.memory_space<vmem>>, %arg7: memref<32x1xf32, #tpu.memory_space<vmem>>, %arg8: memref<32x32xf32, #tpu.memory_space<vmem>>, %arg9: memref<32x1xf32, #tpu.memory_space<vmem>>, %arg10: memref<32x32xf32, #tpu.memory_space<vmem>>, %arg11: memref<32x1xf32, #tpu.memory_space<vmem>>, %arg12: memref<16x96xf32, #tpu.memory_space<vmem>>, %arg13: memref<16x1xf32, #tpu.memory_space<vmem>>, %arg14: memref<1x48xf32, #tpu.memory_space<vmem>>, %arg15: memref<1x1xf32, #tpu.memory_space<vmem>>, %arg16: memref<1x1x256xf32, #tpu.memory_space<vmem>>) attributes {dimension_semantics = [#tpu.dimension_semantics<parallel>], iteration_bounds = array<i64: 1>, scalar_prefetch = 0 : i64, scratch_operands = 0 : i64, tpu.core_type = #tpu.core_type<tc>, window_params = [{transform_indices = @transform_0, window_bounds = array<i64: 1, 1, 256>}, {transform_indices = @transform_1, window_bounds = array<i64: 1, 32, 2>}, {pipeline_mode = #tpu.pipeline_mode<synchronous>, transform_indices = @transform_2, window_bounds = array<i64: 2, 256>}, {pipeline_mode = #tpu.pipeline_mode<synchronous>, transform_indices = @transform_3, window_bounds = array<i64: 16, 3>}, {pipeline_mode = #tpu.pipeline_mode<synchronous>, transform_indices = @transform_4, window_bounds = array<i64: 16, 1>}, {pipeline_mode = #tpu.pipeline_mode<synchronous>, transform_indices = @transform_5, window_bounds = array<i64: 32, 48>}, {pipeline_mode = #tpu.pipeline_mode<synchronous>, transform_indices = @transform_6, window_bounds = array<i64: 32, 1>}, {pipeline_mode = #tpu.pipeline_mode<synchronous>, transform_indices = @transform_7, window_bounds = array<i64: 32, 32>}, {pipeline_mode = #tpu.pipeline_mode<synchronous>, transform_indices = @transform_8, window_bounds = array<i64: 32, 1>}, {pipeline_mode = #tpu.pipeline_mode<synchronous>, transform_indices = @transform_9, window_bounds = array<i64: 32, 32>}, {pipeline_mode = #tpu.pipeline_mode<synchronous>, transform_indices = @transform_10, window_bounds = array<i64: 32, 1>}, {pipeline_mode = #tpu.pipeline_mode<synchronous>, transform_indices = @transform_11, window_bounds = array<i64: 16, 96>}, {pipeline_mode = #tpu.pipeline_mode<synchronous>, transform_indices = @transform_12, window_bounds = array<i64: 16, 1>}, {pipeline_mode = #tpu.pipeline_mode<synchronous>, transform_indices = @transform_13, window_bounds = array<i64: 1, 48>}, {pipeline_mode = #tpu.pipeline_mode<synchronous>, transform_indices = @transform_14, window_bounds = array<i64: 1, 1>}, {transform_indices = @transform_15, window_bounds = array<i64: 1, 1, 256>}]} {
    %c0 = arith.constant 0 : index
    %c0_0 = arith.constant 0 : index
    %c0_1 = arith.constant 0 : index
    %0 = vector.load %arg1[%c0, %c0_0, %c0_1] : memref<1x1x256xf32, #tpu.memory_space<vmem>>, vector<1x1x256xf32>
    %1 = vector.shape_cast %0 : vector<1x1x256xf32> to vector<1x256xf32>
    %c0_2 = arith.constant 0 : index
    %c0_3 = arith.constant 0 : index
    %c0_4 = arith.constant 0 : index
    %2 = vector.load %arg2[%c0_2, %c0_3, %c0_4] : memref<1x32x2xf32, #tpu.memory_space<vmem>>, vector<1x32x2xf32>
    %3 = vector.shape_cast %2 : vector<1x32x2xf32> to vector<32x2xf32>
    %c0_5 = arith.constant 0 : index
    %c0_6 = arith.constant 0 : index
    %4 = vector.load %arg3[%c0_5, %c0_6] : memref<2x256xf32, #tpu.memory_space<vmem>>, vector<1x256xf32>
    %c1 = arith.constant 1 : index
    %c0_7 = arith.constant 0 : index
    %5 = vector.load %arg3[%c1, %c0_7] : memref<2x256xf32, #tpu.memory_space<vmem>>, vector<1x256xf32>
    %c1_i32 = arith.constant 1 : i32
    %6 = tpu.dynamic_rotate %1 by %c1_i32 dim 1 : vector<1x256xf32>, i32 -> vector<1x256xf32>
    %7 = arith.mulf %6, %4 : vector<1x256xf32>
    %c255_i32 = arith.constant 255 : i32
    %8 = tpu.dynamic_rotate %1 by %c255_i32 dim 1 : vector<1x256xf32>, i32 -> vector<1x256xf32>
    %9 = arith.mulf %8, %5 : vector<1x256xf32>
    %10 = tpu.concatenate %7, %1, %9 in 0 : vector<1x256xf32>, vector<1x256xf32>, vector<1x256xf32> -> vector<3x256xf32>
    %c0_8 = arith.constant 0 : index
    %c0_9 = arith.constant 0 : index
    %11 = vector.load %arg4[%c0_8, %c0_9] : memref<16x3xf32, #tpu.memory_space<vmem>>, vector<16x3xf32>
    %cst = arith.constant dense<0.000000e+00> : vector<16x256xf32>
    %12 = tpu.matmul %11, %10, %cst {dimension_numbers = #tpu.dot_dimension_numbers<[1], [0], [0], [1], [0, 0, 1, 1], [], []>} : vector<16x3xf32>, vector<3x256xf32>, vector<16x256xf32> -> vector<16x256xf32>
    %c0_10 = arith.constant 0 : index
    %c0_11 = arith.constant 0 : index
    %13 = vector.load %arg5[%c0_10, %c0_11] : memref<16x1xf32, #tpu.memory_space<vmem>>, vector<16x1xf32>
    %14 = vector.broadcast %13 : vector<16x1xf32> to vector<16x256xf32>
    %15 = arith.addf %12, %14 : vector<16x256xf32>
    %cst_12 = arith.constant 0.000000e+00 : f32
    %16 = vector.broadcast %cst_12 : f32 to vector<16x256xf32>
    %17 = arith.maximumf %15, %16 : vector<16x256xf32>
    %c1_i32_13 = arith.constant 1 : i32
    %18 = tpu.dynamic_rotate %17 by %c1_i32_13 dim 1 : vector<16x256xf32>, i32 -> vector<16x256xf32>
    %19 = vector.broadcast %4 : vector<1x256xf32> to vector<16x256xf32>
    %20 = arith.mulf %18, %19 : vector<16x256xf32>
    %c255_i32_14 = arith.constant 255 : i32
    %21 = tpu.dynamic_rotate %17 by %c255_i32_14 dim 1 : vector<16x256xf32>, i32 -> vector<16x256xf32>
    %22 = vector.broadcast %5 : vector<1x256xf32> to vector<16x256xf32>
    %23 = arith.mulf %21, %22 : vector<16x256xf32>
    %24 = tpu.concatenate %20, %17, %23 in 0 : vector<16x256xf32>, vector<16x256xf32>, vector<16x256xf32> -> vector<48x256xf32>
    %c0_15 = arith.constant 0 : index
    %c0_16 = arith.constant 0 : index
    %25 = vector.load %arg6[%c0_15, %c0_16] : memref<32x48xf32, #tpu.memory_space<vmem>>, vector<32x48xf32>
    %cst_17 = arith.constant dense<0.000000e+00> : vector<32x256xf32>
    %26 = tpu.matmul %25, %24, %cst_17 {dimension_numbers = #tpu.dot_dimension_numbers<[1], [0], [0], [1], [0, 0, 1, 1], [], []>} : vector<32x48xf32>, vector<48x256xf32>, vector<32x256xf32> -> vector<32x256xf32>
    %c0_18 = arith.constant 0 : index
    %c0_19 = arith.constant 0 : index
    %27 = vector.load %arg7[%c0_18, %c0_19] : memref<32x1xf32, #tpu.memory_space<vmem>>, vector<32x1xf32>
    %28 = vector.broadcast %27 : vector<32x1xf32> to vector<32x256xf32>
    %29 = arith.addf %26, %28 : vector<32x256xf32>
    %cst_20 = arith.constant 0.000000e+00 : f32
    %30 = vector.broadcast %cst_20 : f32 to vector<32x256xf32>
    %31 = arith.maximumf %29, %30 : vector<32x256xf32>
    %c0_21 = arith.constant 0 : index
    %c0_22 = arith.constant 0 : index
    %32 = vector.load %arg8[%c0_21, %c0_22] : memref<32x32xf32, #tpu.memory_space<vmem>>, vector<32x32xf32>
    %cst_23 = arith.constant dense<0.000000e+00> : vector<32x2xf32>
    %33 = tpu.matmul %32, %3, %cst_23 {dimension_numbers = #tpu.dot_dimension_numbers<[1], [0], [0], [1], [0, 0, 1, 1], [], []>} : vector<32x32xf32>, vector<32x2xf32>, vector<32x2xf32> -> vector<32x2xf32>
    %c0_24 = arith.constant 0 : index
    %c0_25 = arith.constant 0 : index
    %34 = vector.load %arg9[%c0_24, %c0_25] : memref<32x1xf32, #tpu.memory_space<vmem>>, vector<32x1xf32>
    %35 = vector.broadcast %34 : vector<32x1xf32> to vector<32x2xf32>
    %36 = arith.addf %33, %35 : vector<32x2xf32>
    %cst_26 = arith.constant 0.000000e+00 : f32
    %37 = vector.broadcast %cst_26 : f32 to vector<32x2xf32>
    %38 = arith.maximumf %36, %37 : vector<32x2xf32>
    %c0_27 = arith.constant 0 : index
    %c0_28 = arith.constant 0 : index
    %39 = vector.load %arg10[%c0_27, %c0_28] : memref<32x32xf32, #tpu.memory_space<vmem>>, vector<32x32xf32>
    %cst_29 = arith.constant dense<0.000000e+00> : vector<32x2xf32>
    %40 = tpu.matmul %39, %38, %cst_29 {dimension_numbers = #tpu.dot_dimension_numbers<[1], [0], [0], [1], [0, 0, 1, 1], [], []>} : vector<32x32xf32>, vector<32x2xf32>, vector<32x2xf32> -> vector<32x2xf32>
    %c0_30 = arith.constant 0 : index
    %c0_31 = arith.constant 0 : index
    %41 = vector.load %arg11[%c0_30, %c0_31] : memref<32x1xf32, #tpu.memory_space<vmem>>, vector<32x1xf32>
    %42 = vector.broadcast %41 : vector<32x1xf32> to vector<32x2xf32>
    %43 = arith.addf %40, %42 : vector<32x2xf32>
    %44 = vector.extract_strided_slice %43 {offsets = [0, 0], sizes = [32, 1], strides = [1, 1]} : vector<32x2xf32> to vector<32x1xf32>
    %45 = vector.shape_cast %44 : vector<32x1xf32> to vector<32x1xf32>
    %46 = vector.broadcast %45 : vector<32x1xf32> to vector<32x128xf32>
    %47 = vector.extract_strided_slice %43 {offsets = [0, 1], sizes = [32, 1], strides = [1, 1]} : vector<32x2xf32> to vector<32x1xf32>
    %48 = vector.shape_cast %47 : vector<32x1xf32> to vector<32x1xf32>
    %49 = vector.broadcast %48 : vector<32x1xf32> to vector<32x128xf32>
    %50 = tpu.concatenate %46, %49 in 1 : vector<32x128xf32>, vector<32x128xf32> -> vector<32x256xf32>
    %51 = arith.addf %31, %50 : vector<32x256xf32>
    %c1_i32_32 = arith.constant 1 : i32
    %52 = tpu.dynamic_rotate %51 by %c1_i32_32 dim 1 : vector<32x256xf32>, i32 -> vector<32x256xf32>
    %53 = vector.broadcast %4 : vector<1x256xf32> to vector<32x256xf32>
    %54 = arith.mulf %52, %53 : vector<32x256xf32>
    %c255_i32_33 = arith.constant 255 : i32
    %55 = tpu.dynamic_rotate %51 by %c255_i32_33 dim 1 : vector<32x256xf32>, i32 -> vector<32x256xf32>
    %56 = vector.broadcast %5 : vector<1x256xf32> to vector<32x256xf32>
    %57 = arith.mulf %55, %56 : vector<32x256xf32>
    %58 = tpu.concatenate %54, %51, %57 in 0 : vector<32x256xf32>, vector<32x256xf32>, vector<32x256xf32> -> vector<96x256xf32>
    %c0_34 = arith.constant 0 : index
    %c0_35 = arith.constant 0 : index
    %59 = vector.load %arg12[%c0_34, %c0_35] : memref<16x96xf32, #tpu.memory_space<vmem>>, vector<16x96xf32>
    %cst_36 = arith.constant dense<0.000000e+00> : vector<16x256xf32>
    %60 = tpu.matmul %59, %58, %cst_36 {dimension_numbers = #tpu.dot_dimension_numbers<[1], [0], [0], [1], [0, 0, 1, 1], [], []>} : vector<16x96xf32>, vector<96x256xf32>, vector<16x256xf32> -> vector<16x256xf32>
    %c0_37 = arith.constant 0 : index
    %c0_38 = arith.constant 0 : index
    %61 = vector.load %arg13[%c0_37, %c0_38] : memref<16x1xf32, #tpu.memory_space<vmem>>, vector<16x1xf32>
    %62 = vector.broadcast %61 : vector<16x1xf32> to vector<16x256xf32>
    %63 = arith.addf %60, %62 : vector<16x256xf32>
    %cst_39 = arith.constant 0.000000e+00 : f32
    %64 = vector.broadcast %cst_39 : f32 to vector<16x256xf32>
    %65 = arith.maximumf %63, %64 : vector<16x256xf32>
    %c1_i32_40 = arith.constant 1 : i32
    %66 = tpu.dynamic_rotate %65 by %c1_i32_40 dim 1 : vector<16x256xf32>, i32 -> vector<16x256xf32>
    %67 = vector.broadcast %4 : vector<1x256xf32> to vector<16x256xf32>
    %68 = arith.mulf %66, %67 : vector<16x256xf32>
    %c255_i32_41 = arith.constant 255 : i32
    %69 = tpu.dynamic_rotate %65 by %c255_i32_41 dim 1 : vector<16x256xf32>, i32 -> vector<16x256xf32>
    %70 = vector.broadcast %5 : vector<1x256xf32> to vector<16x256xf32>
    %71 = arith.mulf %69, %70 : vector<16x256xf32>
    %72 = tpu.concatenate %68, %65, %71 in 0 : vector<16x256xf32>, vector<16x256xf32>, vector<16x256xf32> -> vector<48x256xf32>
    %c0_42 = arith.constant 0 : index
    %c0_43 = arith.constant 0 : index
    %73 = vector.load %arg14[%c0_42, %c0_43] : memref<1x48xf32, #tpu.memory_space<vmem>>, vector<1x48xf32>
    %cst_44 = arith.constant dense<0.000000e+00> : vector<1x256xf32>
    %74 = tpu.matmul %73, %72, %cst_44 {dimension_numbers = #tpu.dot_dimension_numbers<[1], [0], [0], [1], [0, 0, 1, 1], [], []>} : vector<1x48xf32>, vector<48x256xf32>, vector<1x256xf32> -> vector<1x256xf32>
    %c0_45 = arith.constant 0 : index
    %c0_46 = arith.constant 0 : index
    %75 = vector.load %arg15[%c0_45, %c0_46] : memref<1x1xf32, #tpu.memory_space<vmem>>, vector<1x1xf32>
    %76 = vector.broadcast %75 : vector<1x1xf32> to vector<1x256xf32>
    %77 = arith.addf %74, %76 : vector<1x256xf32>
    %78 = math.tanh %77 : vector<1x256xf32>
    %c0_47 = arith.constant 0 : index
    %c0_48 = arith.constant 0 : index
    %c0_49 = arith.constant 0 : index
    %79 = vector.load %arg16[%c0_47, %c0_48, %c0_49] : memref<1x1x256xf32, #tpu.memory_space<vmem>>, vector<1x1x256xf32>
    %80 = vector.shape_cast %79 : vector<1x1x256xf32> to vector<1x256xf32>
    %81 = vector.shape_cast %78 : vector<1x256xf32> to vector<1x1x256xf32>
    tpu.vector_store %arg16[%c0_47, %c0_48, %c0_49], %81 {strides = array<i32>} : memref<1x1x256xf32, #tpu.memory_space<vmem>>, vector<1x1x256xf32>,
    return
  }
  func.func @transform_0(%arg0: i32) -> (i32, i32, i32) {
    %c0_i32 = arith.constant 0 : i32
    %c0_i32_0 = arith.constant 0 : i32
    %c0_i32_1 = arith.constant 0 : i32
    return %arg0, %c0_i32, %c0_i32_0 : i32, i32, i32
  }
  func.func @transform_1(%arg0: i32) -> (i32, i32, i32) {
    %c0_i32 = arith.constant 0 : i32
    %c0_i32_0 = arith.constant 0 : i32
    %c0_i32_1 = arith.constant 0 : i32
    return %arg0, %c0_i32, %c0_i32_0 : i32, i32, i32
  }
  func.func @transform_2(%arg0: i32) -> (i32, i32) {
    %c0_i32 = arith.constant 0 : i32
    %c0_i32_0 = arith.constant 0 : i32
    %c0_i32_1 = arith.constant 0 : i32
    return %c0_i32, %c0_i32_0 : i32, i32
  }
  func.func @transform_3(%arg0: i32) -> (i32, i32) {
    %c0_i32 = arith.constant 0 : i32
    %c0_i32_0 = arith.constant 0 : i32
    %c0_i32_1 = arith.constant 0 : i32
    return %c0_i32, %c0_i32_0 : i32, i32
  }
  func.func @transform_4(%arg0: i32) -> (i32, i32) {
    %c0_i32 = arith.constant 0 : i32
    %c0_i32_0 = arith.constant 0 : i32
    %c0_i32_1 = arith.constant 0 : i32
    return %c0_i32, %c0_i32_0 : i32, i32
  }
  func.func @transform_5(%arg0: i32) -> (i32, i32) {
    %c0_i32 = arith.constant 0 : i32
    %c0_i32_0 = arith.constant 0 : i32
    %c0_i32_1 = arith.constant 0 : i32
    return %c0_i32, %c0_i32_0 : i32, i32
  }
  func.func @transform_6(%arg0: i32) -> (i32, i32) {
    %c0_i32 = arith.constant 0 : i32
    %c0_i32_0 = arith.constant 0 : i32
    %c0_i32_1 = arith.constant 0 : i32
    return %c0_i32, %c0_i32_0 : i32, i32
  }
  func.func @transform_7(%arg0: i32) -> (i32, i32) {
    %c0_i32 = arith.constant 0 : i32
    %c0_i32_0 = arith.constant 0 : i32
    %c0_i32_1 = arith.constant 0 : i32
    return %c0_i32, %c0_i32_0 : i32, i32
  }
  func.func @transform_8(%arg0: i32) -> (i32, i32) {
    %c0_i32 = arith.constant 0 : i32
    %c0_i32_0 = arith.constant 0 : i32
    %c0_i32_1 = arith.constant 0 : i32
    return %c0_i32, %c0_i32_0 : i32, i32
  }
  func.func @transform_9(%arg0: i32) -> (i32, i32) {
    %c0_i32 = arith.constant 0 : i32
    %c0_i32_0 = arith.constant 0 : i32
    %c0_i32_1 = arith.constant 0 : i32
    return %c0_i32, %c0_i32_0 : i32, i32
  }
  func.func @transform_10(%arg0: i32) -> (i32, i32) {
    %c0_i32 = arith.constant 0 : i32
    %c0_i32_0 = arith.constant 0 : i32
    %c0_i32_1 = arith.constant 0 : i32
    return %c0_i32, %c0_i32_0 : i32, i32
  }
  func.func @transform_11(%arg0: i32) -> (i32, i32) {
    %c0_i32 = arith.constant 0 : i32
    %c0_i32_0 = arith.constant 0 : i32
    %c0_i32_1 = arith.constant 0 : i32
    return %c0_i32, %c0_i32_0 : i32, i32
  }
  func.func @transform_12(%arg0: i32) -> (i32, i32) {
    %c0_i32 = arith.constant 0 : i32
    %c0_i32_0 = arith.constant 0 : i32
    %c0_i32_1 = arith.constant 0 : i32
    return %c0_i32, %c0_i32_0 : i32, i32
  }
  func.func @transform_13(%arg0: i32) -> (i32, i32) {
    %c0_i32 = arith.constant 0 : i32
    %c0_i32_0 = arith.constant 0 : i32
    %c0_i32_1 = arith.constant 0 : i32
    return %c0_i32, %c0_i32_0 : i32, i32
  }
  func.func @transform_14(%arg0: i32) -> (i32, i32) {
    %c0_i32 = arith.constant 0 : i32
    %c0_i32_0 = arith.constant 0 : i32
    %c0_i32_1 = arith.constant 0 : i32
    return %c0_i32, %c0_i32_0 : i32, i32
  }
  func.func @transform_15(%arg0: i32) -> (i32, i32, i32) {
    %c0_i32 = arith.constant 0 : i32
    %c0_i32_0 = arith.constant 0 : i32
    %c0_i32_1 = arith.constant 0 : i32
    return %arg0, %c0_i32, %c0_i32_0 : i32, i32, i32
  }
}

</mosaic_0001>

<bundles_post_ra>
// kernel: unet1d_forward.1
= control target key start
LH: loop header
LB: loop body
LE: loop exit
PB: predicated region body
PF: predicated region fallthrough
CT: control target
= control target key end

     0   :  { %s1693_s0 = inlined_call_operand.vmem [shape: f32[1,1,256], index: 0, kind: input, shape index: {}]   ;;  %s1694_s1 = inlined_call_operand.vmem [shape: f32[1,32,2], index: 1, kind: input, shape index: {}]   ;;  %s1695_s2 = inlined_call_operand.vmem [shape: f32[2,256], index: 2, kind: input, shape index: {}]   ;;  %s1696_s3 = inlined_call_operand.vmem [shape: f32[16,3], index: 3, kind: input, shape index: {}]   ;;  %s1697_s4 = inlined_call_operand.vmem [shape: f32[16,1], index: 4, kind: input, shape index: {}]   ;;  %s1698_s5 = inlined_call_operand.vmem [shape: f32[32,48], index: 5, kind: input, shape index: {}]   ;;  %s1699_s6 = inlined_call_operand.vmem [shape: f32[32,1], index: 6, kind: input, shape index: {}]   ;;  %s1700_s7 = inlined_call_operand.vmem [shape: f32[32,32], index: 7, kind: input, shape index: {}]   ;;  %s1701_s8 = inlined_call_operand.vmem [shape: f32[32,1], index: 8, kind: input, shape index: {}]   ;;  %s1702_s9 = inlined_call_operand.vmem [shape: f32[32,32], index: 9, kind: input, shape index: {}]   ;;  %s1703_s10 = inlined_call_operand.vmem [shape: f32[32,1], index: 10, kind: input, shape index: {}]   ;;  %s1704_s11 = inlined_call_operand.vmem [shape: f32[16,96], index: 11, kind: input, shape index: {}]   ;;  %s1705_s12 = inlined_call_operand.vmem [shape: f32[16,1], index: 12, kind: input, shape index: {}]   ;;  %s1706_s13 = inlined_call_operand.vmem [shape: f32[1,48], index: 13, kind: input, shape index: {}]   ;;  %s1707_s14 = inlined_call_operand.<no memory space> [shape: f32[1,1], index: 14, kind: input, shape index: {}]   ;;  %s1708_s15 = inlined_call_operand.hbm [shape: f32[1,1,256], index: 15, kind: output, shape index: {}]  }
   0x1   :  { %v20_v0 = vstv %s1707_s14 }
   0x2   :  { %21 = vst [vmem:[#allocation2] sm:$0x1] %v20_v0 }
   0x3   :  { %v62_v1 = vlaneseq }
   0x4   :  { %22 = vsyncpa [#allocation4], 0  ;;  %v53_v3 = vld [vmem:[%s1693_s0] sm:$0x3]  ;;  %v1197_v7 = vmov 0.0   ;;  %s1198_s14 = smov 1  }
   0x5   :  { %v1288_v2 = vshrl.u32 %v62_v1, 7  ;;  %218 = vmatprep.mubr.f32.mxu0 %v1197_v7  ;;  %372 = vmatprep.mubr.f32.mxu1 %v1197_v7  ;;  %s1199_s22 = smov 127   ;;  %v129_v9 = vld [vmem:[%s1697_s4 + $0x8] sm:$0xff]  ;;  %v128_v10 = vld [vmem:[%s1697_s4] sm:$0xff]  ;;  %v1200_v11 = vmov 0   ;;  %v411_v14 = vld [vmem:[%s1701_s8 + $0x10] sm:$0xff] }
   0x6   :  { %1162 = vset.pattern.permute.xlu1 %v1200_v11  ;;  %1161 = vset.pattern.permute.xlu0 %v1200_v11  ;;  %v409_v12 = vld [vmem:[%s1701_s8] sm:$0xff]  ;;  %v410_v13 = vld [vmem:[%s1701_s8 + $0x8] sm:$0xff]  ;;  %v412_v15 = vld [vmem:[%s1701_s8 + $0x18] sm:$0xff]  ;;  %v1325_v16 = vand.u32 127, %v62_v1  ;;  %vm120_vm2 = vcmask 1040384   ;;  %vm123_vm3 = vcmask 1041408  }
   0x7   :  { %v1294_v4 = vsub.s32 0, %v1288_v2  ;;  %v68_v5 = vsub.s32 1, %v1288_v2  ;;  %v58_v17 = vld [vmem:[%s1695_s2] ss:$2 sm:$0x3]  ;;  %v55_v36 = vld [vmem:[%s1694_s1 + $0x8] sm:$0xff] }
   0x8   :  { %v1026_v18 = vld [vmem:[%s1695_s2 + $0x1] ss:$2 sm:$0x3]  ;;  %vm78_vm0 = vcmp.lt.s32.totalorder %v1325_v16, 1  ;;  %vm98_vm1 = vcmp.lt.s32.totalorder %v1325_v16, 127  ;;  %vm147_vm4 = vcmask 1042432  }
   0x9   :  { %v65_v6 = vrot.slane %v53_v3, %v1294_v4  ;;  %v69_v8 = vrot.slane %v53_v3, %v68_v5  ;;  %v1336_v21 = vrot.slane %v58_v17, %v1294_v4  ;;  %v1338_v22 = vrot.slane %v58_v17, %v68_v5  ;;  %v54_v35 = vld [vmem:[%s1694_s1] sm:$0xff]  ;;  %v56_v41 = vld [vmem:[%s1694_s1 + $0x10] sm:$0xff]  ;;  %v57_v42 = vld [vmem:[%s1694_s1 + $0x18] sm:$0xff] }
   0xa   :  { %v1341_v23 = vrot.slane %v1026_v18, %v1294_v4  ;;  %v1343_v24 = vrot.slane %v1026_v18, %v68_v5  ;;  %v1102_v43 = vpack.c.bf16 %v55_v36, %v54_v35  ;;  %v126_v46 = vld [vmem:[%s1696_s3] sm:$0xff]  ;;  %vm140_vm5 = vcmask 23552   ;;  %v127_v48 = vld [vmem:[%s1696_s3 + $0x8] sm:$0xff]  ;;  %v407_v51 = vld [vmem:[%s1700_s7 + $0x10] sm:$0xff] }
   0xb   :  { %72 = vrot.lane.b32.xlu1 %v65_v6, %s1198_s14  ;;  %94 = vrot.lane.b32.xlu0 %v65_v6, %s1199_s22  ;;  %v1106_v47 = vpack.c.bf16 %v57_v42, %v56_v41  ;;  %v405_v49 = vld [vmem:[%s1700_s7] sm:$0xff]  ;;  %vm433_vm6 = vcmask 261120   ;;  %v406_v50 = vld [vmem:[%s1700_s7 + $0x8] sm:$0xff]  ;;  %vm295_vm7 = vcmask 392192   ;;  %vm782_vm8 = vcmask 785408  }
   0xc   :  { %v408_v52 = vld [vmem:[%s1700_s7 + $0x18] sm:$0xff]  ;;  %v535_v53 = vld [vmem:[%s1702_s9] sm:$0xff]  ;;  %v536_v35 = vld [vmem:[%s1702_s9 + $0x8] sm:$0xff]  ;;  %vm1009_vm9 = vcmp.lt.s32.totalorder %v62_v1, 256 }
   0xd   :  { %v540_v36 = vld [vmem:[%s1703_s10 + $0x8] sm:$0xff]  ;;  %v271_v41 = vld [vmem:[%s1699_s6] sm:$0xff] }
   0xe   :  { %v272_v42 = vld [vmem:[%s1699_s6 + $0x8] sm:$0xff] }
   0xf   :  { %74 = vrot.lane.b32.xlu1 %v69_v8, %s1198_s14  ;;  %96 = vrot.lane.b32.xlu0 %v69_v8, %s1199_s22 }
  0x13   :  { %137 = vperm.xlu1 %1162, %v129_v9   ;;  %132 = vperm.xlu0 %1161, %v128_v10  }
  0x17   :  { %415 = vperm.xlu1 %1162, %v409_v12   ;;  %420 = vperm.xlu0 %1161, %v410_v13  }
  0x1b   :  { %425 = vperm.xlu1 %1162, %v411_v14   ;;  %430 = vperm.xlu0 %1161, %v412_v15  }
  0x7d   :  { %v73_v19 = vpop.permute.xlu1 %72  ;;  %v95_v20 = vpop.permute.xlu0 %94 }
  0x81   :  { %v75_v25 = vpop.permute.xlu1 %74  ;;  %v97_v26 = vpop.permute.xlu0 %96 }
  0x82   :  { %v79_v27 = vsel %vm78_vm0, %v73_v19, %v75_v25  ;;  %v80_v28 = vsel %vm78_vm0, %v75_v25, %v73_v19  ;;  %v99_v29 = vsel %vm98_vm1, %v95_v20, %v97_v26  ;;  %v100_v30 = vsel %vm98_vm1, %v97_v26, %v95_v20 }
  0x83   :  { %v92_v31 = vmul.f32 %v1336_v21, %v80_v28  ;;  %v93_v32 = vmul.f32 %v1338_v22, %v79_v27  ;;  %v112_v33 = vmul.f32 %v1341_v23, %v99_v29  ;;  %v113_v34 = vmul.f32 %v1343_v24, %v100_v30 }
  0x85   :  { %v116_v37 = vrot.slane %v112_v33, 6  ;;  %v117_v38 = vrot.slane %v113_v34, 6  ;;  %v122_v39 = vsel %vm120_vm2, %v93_v32, %v69_v8  ;;  %v121_v40 = vsel %vm120_vm2, %v92_v31, %v65_v6  ;;  %v539_v34 = vld [vmem:[%s1703_s10] sm:$0xff] }
  0x87   :  { %v125_v44 = vsel %vm123_vm3, %v122_v39, %v117_v38  ;;  %v124_v45 = vsel %vm123_vm3, %v121_v40, %v116_v37  ;;  %v541_v37 = vld [vmem:[%s1703_s10 + $0x10] sm:$0xff]  ;;  %v538_v39 = vld [vmem:[%s1702_s9 + $0x18] sm:$0xff] }
  0x88   :  { %1027 = vmatprep.subr.msk.mxu0 %vm147_vm4, %v125_v44  ;;  %v537_v38 = vld [vmem:[%s1702_s9 + $0x10] sm:$0xff]  ;;  %v542_v40 = vld [vmem:[%s1703_s10 + $0x18] sm:$0xff] }
  0x89   :  { %1028 = vmatpush1.msk.msra.mxu0 %vm147_vm4, %v124_v45  ;;  %v274_v44 = vld [vmem:[%s1699_s6 + $0x18] sm:$0xff] }
  0x8a   :  { %1029 = vmatmul.mubr.msk.f32.vlgmr.msra.gmra.mrb[0].mxu0 %vm140_vm5, %v126_v46  ;;  %1103 = vmatprep.subr.bf16.mxu0 %v1102_v43 }
  0x8b   :  { %1105 = vmatpush3.bf16.msra.mxu0 %v1102_v43  ;;  %224 = vmatprep.mubr.f32.mxu0 %v1197_v7  ;;  %v273_v43 = vld [vmem:[%s1699_s6 + $0x10] sm:$0xff] }
  0x8c   :  { %1107 = vmatprep.subr.bf16.mxu0 %v1106_v47 }
  0x8e   :  { %1030 = vmatmul.mubr.msk.f32.gmra.mrb[2].mxu0 %vm140_vm5, %v127_v48 }
  0x8f   :  { %1109 = vmatpush3.bf16.msra.mxu0 %v1106_v47  ;;  %1070 = vmatprep.mubr.msk.f32.mxu0 %vm433_vm6, %v405_v49 }
  0x92   :  { %1071 = vmatmul.mubr.msk.f32.vlgmr.msra.gmra.mrb[4].mxu0 %vm433_vm6, %v406_v50  ;;  %v133_v54 = vpop.permute.xlu0 %132  ;;  %v138_v56 = vpop.permute.xlu1 %137 }
  0x93   :  { %1073 = vmatprep.mubr.msk.f32.mxu0 %vm433_vm6, %v407_v51 }
  0x96   :  { %1074 = vmatmul.mubr.msk.f32.gmra.mrb[6].mxu0 %vm433_vm6, %v408_v52  ;;  %v421_v0 = vpop.permute.xlu0 %420  ;;  %v416_v5 = vpop.permute.xlu1 %415 }
  0x97   :  { %1084 = vmatprep.mubr.msk.f32.mxu0 %vm433_vm6, %v535_v53 }
  0x9a   :  { %v431_v19 = vpop.permute.xlu0 %430  ;;  %v426_v26 = vpop.permute.xlu1 %425 }
 0x15d   :  { %v220_v55 = vpop.f32.mrb[0].mxu0 }
 0x15e   :  { %v221_v57 = vadd.f32 %v220_v55, %v133_v54  ;;  %v222_v58 = vpop.f32.mrb[1].mxu0 }
 0x15f   :  { %v223_v60 = vadd.f32 %v222_v58, %v133_v54 }
 0x160   :  { %v1398_v59 = vmax.f32 %v221_v57, 0.0 }
 0x161   :  { %v226_v61 = vpop.f32.mrb[2].mxu0  ;;  %v1402_v6 = vmax.f32 %v223_v60, 0.0 }
 0x162   :  { %v227_v62 = vadd.f32 %v226_v61, %v138_v56  ;;  %v228_v63 = vpop.f32.mrb[3].mxu0  ;;  %235 = vrot.lane.b32.xlu1 %v1398_v59, %s1198_s14 }
 0x163   :  { %v229_v3 = vadd.f32 %v228_v63, %v138_v56 }
 0x164   :  { %v1404_v8 = vmax.f32 %v227_v62, 0.0 }
 0x165   :  { %v1406_v9 = vmax.f32 %v229_v3, 0.0  ;;  %v1072_v10 = vpop.f32.mrb[4].mxu0 }
 0x166   :  { %v518_v12 = vadd.f32 %v1072_v10, %v421_v0  ;;  %v512_v13 = vpop.f32.mrb[5].mxu0  ;;  %237 = vrot.lane.b32.xlu0 %v1404_v8, %s1198_s14  ;;  %239 = vrot.lane.b32.xlu1 %v1402_v6, %s1198_s14  ;;  %v1096_v14 = vpack.c.bf16 %v1404_v8, %v1398_v59 }
 0x167   :  { %v513_v15 = vadd.f32 %v512_v13, %v416_v5  ;;  %v1094_v17 = vpack.c.bf16 %v1406_v9, %v1402_v6 }
 0x168   :  { %v532_v18 = vmax.f32 %v518_v12, 0.0 }
 0x169   :  { %v531_v20 = vmax.f32 %v513_v15, 0.0  ;;  %v1075_v25 = vpop.f32.mrb[6].mxu0 }
 0x16a   :  { %v528_v27 = vadd.f32 %v1075_v25, %v431_v19  ;;  %v522_v28 = vpop.f32.mrb[7].mxu0  ;;  %241 = vrot.lane.b32.xlu0 %v1406_v9, %s1198_s14  ;;  %251 = vrot.lane.b32.xlu1 %v1398_v59, %s1199_s22  ;;  %v268_v19 = vld [vmem:[%s1698_s5 + $0x8] sm:$0xff]  ;;  %v269_v59 = vld [vmem:[%s1698_s5 + $0x10] sm:$0xff] }
 0x16b   :  { %v1110_v29 = vpack.c.bf16 %v532_v18, %v531_v20  ;;  %v523_v30 = vadd.f32 %v522_v28, %v426_v26 }
 0x16c   :  { %v534_v31 = vmax.f32 %v528_v27, 0.0 }
 0x16d   :  { %v533_v32 = vmax.f32 %v523_v30, 0.0  ;;  %1111 = vmatprep.subr.bf16.mxu0 %v1110_v29 }
 0x16e   :  { %253 = vrot.lane.b32.xlu0 %v1404_v8, %s1199_s22  ;;  %255 = vrot.lane.b32.xlu1 %v1402_v6, %s1199_s22  ;;  %v270_v8 = vld [vmem:[%s1698_s5 + $0x18] sm:$0xff] }
 0x16f   :  { %v1114_v33 = vpack.c.bf16 %v534_v31, %v533_v32  ;;  %1113 = vmatpush3.bf16.msra.mxu0 %v1110_v29  ;;  %v1201_v31 = vmov 1  }
 0x171   :  { %1115 = vmatprep.subr.bf16.mxu0 %v1114_v33 }
 0x172   :  { %257 = vrot.lane.b32.xlu0 %v1406_v9, %s1199_s22  ;;  %545 = vperm.xlu1 %1162, %v539_v34  }
 0x173   :  { %1117 = vmatpush3.bf16.msra.mxu0 %v1114_v33 }
 0x176   :  { %1085 = vmatmul.mubr.msk.f32.vlgmr.msra.gmra.mrb[8].mxu0 %vm433_vm6, %v536_v35  ;;  %550 = vperm.xlu0 %1161, %v540_v36  }
 0x177   :  { %555 = vperm.xlu1 %1162, %v541_v37   ;;  %1087 = vmatprep.mubr.msk.f32.mxu0 %vm433_vm6, %v537_v38 }
 0x17a   :  { %1088 = vmatmul.mubr.msk.f32.gmra.mrb[10].mxu0 %vm433_vm6, %v538_v39  ;;  %560 = vperm.xlu0 %1161, %v542_v40  }
 0x17b   :  { %277 = vperm.xlu1 %1162, %v271_v41   ;;  %980 = vmatprep.mubr.f32.mxu0 %v1197_v7 }
 0x17e   :  { %282 = vperm.xlu0 %1161, %v272_v42  }
 0x17f   :  { %287 = vperm.xlu1 %1162, %v273_v43  }
 0x182   :  { %292 = vperm.xlu0 %1161, %v274_v44  }
 0x1d4   :  { %v236_v45 = vpop.permute.xlu1 %235 }
 0x1d8   :  { %v240_v46 = vpop.permute.xlu1 %239  ;;  %v238_v47 = vpop.permute.xlu0 %237 }
 0x1d9   :  { %v243_v48 = vsel %vm78_vm0, %v236_v45, %v240_v46  ;;  %v245_v49 = vsel %vm78_vm0, %v240_v46, %v236_v45 }
 0x1da   :  { %v247_v54 = vmul.f32 %v245_v49, %v1336_v21  ;;  %v248_v56 = vmul.f32 %v243_v48, %v1338_v22 }
 0x1dc   :  { %v252_v50 = vpop.permute.xlu1 %251  ;;  %v242_v51 = vpop.permute.xlu0 %241 }
 0x1dd   :  { %v244_v52 = vsel %vm78_vm0, %v238_v47, %v242_v51  ;;  %v246_v53 = vsel %vm78_vm0, %v242_v51, %v238_v47 }
 0x1de   :  { %v249_v55 = vmul.f32 %v246_v53, %v1336_v21  ;;  %v250_v57 = vmul.f32 %v244_v52, %v1338_v22 }
 0x1e0   :  { %v256_v58 = vpop.permute.xlu1 %255  ;;  %v254_v60 = vpop.permute.xlu0 %253  ;;  %v1090_v61 = vpack.c.bf16 %v250_v57, %v248_v56  ;;  %v1092_v62 = vpack.c.bf16 %v249_v55, %v247_v54 }
 0x1e1   :  { %v259_v63 = vsel %vm98_vm1, %v252_v50, %v256_v58  ;;  %v261_v0 = vsel %vm98_vm1, %v256_v58, %v252_v50 }
 0x1e2   :  { %1091 = vmatprep.subr.bf16.mxu1 %v1090_v61  ;;  %v263_v12 = vmul.f32 %v259_v63, %v1341_v23  ;;  %v264_v13 = vmul.f32 %v261_v0, %v1343_v24 }
 0x1e3   :  { %1093 = vmatpush1.bf16.msra.mxu1 %v1092_v62 }
 0x1e4   :  { %1095 = vmatprep.subr.bf16.mxu1 %v1094_v17  ;;  %v258_v3 = vpop.permute.xlu0 %257  ;;  %v267_v17 = vld [vmem:[%s1698_s5] sm:$0xff] }
 0x1e5   :  { %v260_v5 = vsel %vm98_vm1, %v254_v60, %v258_v3  ;;  %v262_v10 = vsel %vm98_vm1, %v258_v3, %v254_v60 }
 0x1e6   :  { %v265_v15 = vmul.f32 %v260_v5, %v1341_v23  ;;  %v266_v18 = vmul.f32 %v262_v10, %v1343_v24 }
 0x1e7   :  { %1097 = vmatpush1.bf16.msra.mxu1 %v1096_v14 }
 0x1e8   :  { %v1098_v6 = vpack.c.bf16 %v266_v18, %v264_v13  ;;  %v1100_v9 = vpack.c.bf16 %v265_v15, %v263_v12 }
 0x1ea   :  { %1099 = vmatprep.subr.bf16.mxu1 %v1098_v6 }
 0x1eb   :  { %1101 = vmatpush1.bf16.msra.mxu1 %v1100_v9 }
 0x1ee   :  { %1031 = vmatmul.mubr.msk.f32.vlgmr.msra.gmra.mrb[0].mxu1 %vm295_vm7, %v267_v17 }
 0x1ef   :  { %378 = vmatprep.mubr.f32.mxu1 %v1197_v7 }
 0x1f1   :  { %v546_v25 = vpop.permute.xlu1 %545 }
 0x1f2   :  { %1032 = vmatmul.mubr.msk.f32.gmra.mrb[2].mxu1 %vm295_vm7, %v268_v19 }
 0x1f3   :  { %384 = vmatprep.mubr.f32.mxu1 %v1197_v7 }
 0x1f5   :  { %v551_v14 = vpop.permute.xlu0 %550 }
 0x1f6   :  { %1033 = vmatmul.mubr.msk.f32.gmra.mrb[4].mxu1 %vm295_vm7, %v269_v59  ;;  %v556_v32 = vpop.permute.xlu1 %555 }
 0x1f7   :  { %390 = vmatprep.mubr.f32.mxu1 %v1197_v7 }
 0x1f9   :  { %v561_v34 = vpop.permute.xlu0 %560 }
 0x1fa   :  { %1034 = vmatmul.mubr.msk.f32.gmra.mrb[6].mxu1 %vm295_vm7, %v270_v8  ;;  %v278_v38 = vpop.permute.xlu1 %277 }
 0x1fb   :  { %853 = vmatprep.mubr.f32.mxu1 %v1197_v7 }
 0x1fd   :  { %v283_v36 = vpop.permute.xlu0 %282 }
 0x1fe   :  { %v288_v45 = vpop.permute.xlu1 %287 }
 0x201   :  { %v293_v43 = vpop.permute.xlu0 %292 }
 0x249   :  { %v1086_v20 = vpop.f32.mrb[8].mxu0 }
 0x24a   :  { %v647_v26 = vadd.f32 %v1086_v20, %v551_v14  ;;  %v641_v27 = vpop.f32.mrb[9].mxu0 }
 0x24b   :  { %v642_v28 = vadd.f32 %v641_v27, %v546_v25 }
 0x24c   :  { %667 = vperm.xlu0 %1161, %v647_v26  }
 0x24d   :  { %v1089_v29 = vpop.f32.mrb[10].mxu0  ;;  %662 = vperm.xlu1 %1162, %v642_v28  }
 0x24e   :  { %v651_v30 = vpop.f32.mrb[11].mxu0  ;;  %v657_v35 = vadd.f32 %v1089_v29, %v561_v34  ;;  %v770_v29 = vld [vmem:[%s1705_s12] sm:$0xff] }
 0x24f   :  { %v652_v33 = vadd.f32 %v651_v30, %v556_v32  ;;  %v771_v30 = vld [vmem:[%s1705_s12 + $0x8] sm:$0xff] }
 0x250   :  { %1163 = vset.pattern.permute.xlu0 %v1201_v31 }
 0x251   :  { %1164 = vset.pattern.permute.xlu1 %v1201_v31  ;;  %685 = vperm.xlu0 %1163, %v647_v26  }
 0x252   :  { %681 = vperm.xlu1 %1164, %v642_v28  }
 0x255   :  { %689 = vperm.xlu0 %1163, %v652_v33  }
 0x256   :  { %1165 = vset.pattern.permute.xlu1 %v1200_v11 }
 0x257   :  { %677 = vperm.xlu1 %1165, %v657_v35  }
 0x259   :  { %1167 = vset.pattern.permute.xlu0 %v1200_v11 }
 0x25b   :  { %672 = vperm.xlu1 %1165, %v652_v33  }
 0x25f   :  { %1166 = vset.pattern.permute.xlu1 %v1201_v31 }
 0x260   :  { %693 = vperm.xlu1 %1166, %v657_v35  }
 0x264   :  { %1168 = vset.pattern.permute.xlu1 %v1200_v11 }
 0x2c1   :  { %v374_v37 = vpop.f32.mrb[0].mxu1 }
 0x2c2   :  { %v376_v39 = vpop.f32.mrb[1].mxu1  ;;  %v375_v44 = vadd.f32 %v374_v37, %v278_v38 }
 0x2c3   :  { %v377_v52 = vadd.f32 %v376_v39, %v278_v38 }
 0x2c4   :  { %v397_v49 = vmax.f32 %v375_v44, 0.0 }
 0x2c5   :  { %v380_v40 = vpop.f32.mrb[2].mxu1  ;;  %v398_v60 = vmax.f32 %v377_v52, 0.0 }
 0x2c6   :  { %v381_v41 = vadd.f32 %v380_v40, %v283_v36  ;;  %v382_v42 = vpop.f32.mrb[3].mxu1 }
 0x2c7   :  { %v383_v50 = vadd.f32 %v382_v42, %v283_v36 }
 0x2c8   :  { %v399_v46 = vmax.f32 %v381_v41, 0.0 }
 0x2c9   :  { %v386_v47 = vpop.f32.mrb[4].mxu1  ;;  %v400_v57 = vmax.f32 %v383_v50, 0.0 }
 0x2ca   :  { %v388_v48 = vpop.f32.mrb[5].mxu1  ;;  %v387_v10 = vadd.f32 %v386_v47, %v288_v45 }
 0x2cb   :  { %v668_v51 = vpop.permute.xlu0 %667  ;;  %v389_v6 = vadd.f32 %v388_v48, %v288_v45 }
 0x2cc   :  { %v1516_v53 = vadd.f32 %v668_v51, %v399_v46  ;;  %v663_v11 = vpop.permute.xlu1 %662  ;;  %v401_v18 = vmax.f32 %v387_v10, 0.0 }
 0x2cd   :  { %v1518_v54 = vadd.f32 %v663_v11, %v397_v49  ;;  %v392_v55 = vpop.f32.mrb[6].mxu1  ;;  %v402_v8 = vmax.f32 %v389_v6, 0.0 }
 0x2ce   :  { %706 = vrot.lane.b32.xlu1 %v1516_v53, %s1198_s14  ;;  %v394_v56 = vpop.f32.mrb[7].mxu1  ;;  %v393_v62 = vadd.f32 %v392_v55, %v293_v43 }
 0x2cf   :  { %v1128_v58 = vpack.c.bf16 %v1516_v53, %v1518_v54  ;;  %704 = vrot.lane.b32.xlu0 %v1518_v54, %s1198_s14  ;;  %v395_v9 = vadd.f32 %v394_v56, %v293_v43 }
 0x2d0   :  { %v686_v61 = vpop.permute.xlu0 %685  ;;  %v403_v12 = vmax.f32 %v393_v62, 0.0 }
 0x2d1   :  { %v1526_v63 = vadd.f32 %v686_v61, %v400_v57  ;;  %v682_v0 = vpop.permute.xlu1 %681  ;;  %v404_v20 = vmax.f32 %v395_v9, 0.0 }
 0x2d2   :  { %v1528_v3 = vadd.f32 %v682_v0, %v398_v60 }
 0x2d3   :  { %714 = vrot.lane.b32.xlu1 %v1526_v63, %s1198_s14 }
 0x2d4   :  { %712 = vrot.lane.b32.xlu0 %v1528_v3, %s1198_s14  ;;  %v1126_v5 = vpack.c.bf16 %v1526_v63, %v1528_v3  ;;  %v690_v59 = vpop.permute.xlu0 %689 }
 0x2d5   :  { %v1546_v25 = vadd.f32 %v690_v59, %v402_v8 }
 0x2d6   :  { %v678_v13 = vpop.permute.xlu1 %677 }
 0x2d7   :  { %v1536_v15 = vadd.f32 %v678_v13, %v403_v12 }
 0x2d9   :  { %710 = vrot.lane.b32.xlu1 %v1536_v15, %s1198_s14 }
 0x2da   :  { %v673_v17 = vpop.permute.xlu1 %672 }
 0x2db   :  { %v1540_v19 = vadd.f32 %v673_v17, %v401_v18 }
 0x2dd   :  { %v1132_v14 = vpack.c.bf16 %v1536_v15, %v1540_v19  ;;  %708 = vrot.lane.b32.xlu0 %v1540_v19, %s1198_s14 }
 0x2df   :  { %v694_v26 = vpop.permute.xlu1 %693 }
 0x2e0   :  { %v1548_v27 = vadd.f32 %v694_v26, %v404_v20 }
 0x2e1   :  { %716 = vrot.lane.b32.xlu0 %v1546_v25, %s1198_s14 }
 0x2e2   :  { %718 = vrot.lane.b32.xlu1 %v1548_v27, %s1198_s14  ;;  %v1130_v28 = vpack.c.bf16 %v1548_v27, %v1546_v25 }
 0x2e5   :  { %736 = vrot.lane.b32.xlu0 %v1518_v54, %s1199_s22 }
 0x2e6   :  { %738 = vrot.lane.b32.xlu1 %v1516_v53, %s1199_s22 }
 0x2e9   :  { %744 = vrot.lane.b32.xlu0 %v1528_v3, %s1199_s22 }
 0x2ea   :  { %746 = vrot.lane.b32.xlu1 %v1526_v63, %s1199_s22 }
 0x2ed   :  { %740 = vrot.lane.b32.xlu0 %v1540_v19, %s1199_s22 }
 0x2ee   :  { %742 = vrot.lane.b32.xlu1 %v1536_v15, %s1199_s22 }
 0x2f1   :  { %748 = vrot.lane.b32.xlu0 %v1546_v25, %s1199_s22 }
 0x2f2   :  { %750 = vrot.lane.b32.xlu1 %v1548_v27, %s1199_s22 }
 0x2f5   :  { %774 = vperm.xlu0 %1167, %v770_v29  }
 0x2f6   :  { %779 = vperm.xlu1 %1168, %v771_v30  }
 0x340   :  { %v707_v31 = vpop.permute.xlu1 %706 }
 0x341   :  { %v705_v32 = vpop.permute.xlu0 %704 }
 0x345   :  { %v715_v33 = vpop.permute.xlu1 %714 }
 0x346   :  { %v721_v34 = vsel %vm78_vm0, %v707_v31, %v715_v33  ;;  %v725_v35 = vsel %vm78_vm0, %v715_v33, %v707_v31  ;;  %v713_v36 = vpop.permute.xlu0 %712  ;;  %v769_v33 = vld [vmem:[%s1704_s11 + $0x8] sm:$0xff] }
 0x347   :  { %v730_v37 = vmul.f32 %v725_v35, %v1336_v21  ;;  %v731_v38 = vmul.f32 %v721_v34, %v1338_v22  ;;  %v720_v39 = vsel %vm78_vm0, %v705_v32, %v713_v36  ;;  %v724_v40 = vsel %vm78_vm0, %v713_v36, %v705_v32  ;;  %v768_v32 = vld [vmem:[%s1704_s11] sm:$0xff] }
 0x348   :  { %v728_v41 = vmul.f32 %v724_v40, %v1336_v21  ;;  %v729_v42 = vmul.f32 %v720_v39, %v1338_v22 }
 0x34a   :  { %v1120_v43 = vpack.c.bf16 %v730_v37, %v728_v41  ;;  %v1118_v44 = vpack.c.bf16 %v731_v38, %v729_v42 }
 0x34b   :  { %v711_v46 = vpop.permute.xlu1 %710 }
 0x34c   :  { %1119 = vmatprep.subr.bf16.mxu1 %v1118_v44 }
 0x34d   :  { %1121 = vmatpush1.bf16.msra.mxu1 %v1120_v43 }
 0x34f   :  { %v709_v45 = vpop.permute.xlu0 %708 }
 0x353   :  { %v717_v47 = vpop.permute.xlu0 %716 }
 0x354   :  { %v722_v48 = vsel %vm78_vm0, %v709_v45, %v717_v47  ;;  %v726_v49 = vsel %vm78_vm0, %v717_v47, %v709_v45  ;;  %v719_v50 = vpop.permute.xlu1 %718 }
 0x355   :  { %v732_v51 = vmul.f32 %v726_v49, %v1336_v21  ;;  %v733_v52 = vmul.f32 %v722_v48, %v1338_v22  ;;  %v723_v11 = vsel %vm78_vm0, %v711_v46, %v719_v50  ;;  %v727_v55 = vsel %vm78_vm0, %v719_v50, %v711_v46  ;;  %v903_v49 = vld [vmem:[#allocation2] sm:$0x1] }
 0x356   :  { %v734_v56 = vmul.f32 %v727_v55, %v1336_v21  ;;  %v735_v57 = vmul.f32 %v723_v11, %v1338_v22 }
 0x357   :  { %v737_v60 = vpop.permute.xlu0 %736 }
 0x358   :  { %v1124_v61 = vpack.c.bf16 %v734_v56, %v732_v51  ;;  %v739_v62 = vpop.permute.xlu1 %738  ;;  %v1122_v0 = vpack.c.bf16 %v735_v57, %v733_v52 }
 0x35a   :  { %1123 = vmatprep.subr.bf16.mxu1 %v1122_v0 }
 0x35b   :  { %1125 = vmatpush1.bf16.msra.mxu1 %v1124_v61  ;;  %v745_v10 = vpop.permute.xlu0 %744 }
 0x35c   :  { %v756_v12 = vsel %vm98_vm1, %v745_v10, %v737_v60  ;;  %v747_v13 = vpop.permute.xlu1 %746  ;;  %1127 = vmatprep.subr.bf16.mxu1 %v1126_v5  ;;  %v752_v18 = vsel %vm98_vm1, %v737_v60, %v745_v10 }
 0x35d   :  { %v753_v6 = vsel %vm98_vm1, %v739_v62, %v747_v13  ;;  %v757_v9 = vsel %vm98_vm1, %v747_v13, %v739_v62  ;;  %v761_v17 = vmul.f32 %v756_v12, %v1343_v24  ;;  %v760_v63 = vmul.f32 %v752_v18, %v1341_v23 }
 0x35e   :  { %v763_v59 = vmul.f32 %v757_v9, %v1343_v24  ;;  %v762_v3 = vmul.f32 %v753_v6, %v1341_v23 }
 0x35f   :  { %1129 = vmatpush1.bf16.msra.mxu1 %v1128_v58  ;;  %v741_v8 = vpop.permute.xlu0 %740 }
 0x360   :  { %v743_v5 = vpop.permute.xlu1 %742  ;;  %1131 = vmatprep.subr.bf16.mxu1 %v1130_v28  ;;  %v1134_v20 = vpack.c.bf16 %v763_v59, %v761_v17  ;;  %v1136_v26 = vpack.c.bf16 %v762_v3, %v760_v63 }
 0x363   :  { %1133 = vmatpush1.bf16.msra.mxu1 %v1132_v14  ;;  %v749_v25 = vpop.permute.xlu0 %748 }
 0x364   :  { %v754_v27 = vsel %vm98_vm1, %v741_v8, %v749_v25  ;;  %v758_v53 = vsel %vm98_vm1, %v749_v25, %v741_v8  ;;  %v751_v54 = vpop.permute.xlu1 %750  ;;  %1135 = vmatprep.subr.bf16.mxu1 %v1134_v20 }
 0x365   :  { %v764_v58 = vmul.f32 %v754_v27, %v1341_v23  ;;  %v765_v29 = vmul.f32 %v758_v53, %v1343_v24  ;;  %v755_v28 = vsel %vm98_vm1, %v743_v5, %v751_v54  ;;  %v759_v15 = vsel %vm98_vm1, %v751_v54, %v743_v5  ;;  %v902_v27 = vld [vmem:[%s1706_s13] sm:$0x1]  ;;  %s1203_s13 = smov [#allocation3]  }
 0x366   :  { %v766_v19 = vmul.f32 %v755_v28, %v1341_v23  ;;  %v767_v14 = vmul.f32 %v759_v15, %v1343_v24 }
 0x367   :  { %1137 = vmatpush1.bf16.msra.mxu1 %v1136_v26 }
 0x368   :  { %v1140_v30 = vpack.c.bf16 %v766_v19, %v764_v58  ;;  %v1138_v31 = vpack.c.bf16 %v767_v14, %v765_v29 }
 0x36a   :  { %1139 = vmatprep.subr.bf16.mxu1 %v1138_v31 }
 0x36b   :  { %1141 = vmatpush1.bf16.msra.mxu1 %v1140_v30 }
 0x36e   :  { %1043 = vmatmul.mubr.msk.f32.vlgmr.msra.gmra.mrb[8].mxu1 %vm782_vm8, %v768_v32 }
 0x36f   :  { %859 = vmatprep.mubr.f32.mxu1 %v1197_v7 }
 0x372   :  { %1044 = vmatmul.mubr.msk.f32.gmra.mrb[10].mxu1 %vm782_vm8, %v769_v33 }
 0x374   :  { %v775_v34 = vpop.permute.xlu0 %774 }
 0x375   :  { %v780_v38 = vpop.permute.xlu1 %779 }
 0x441   :  { %v855_v35 = vpop.f32.mrb[8].mxu1 }
 0x442   :  { %v856_v36 = vadd.f32 %v855_v35, %v775_v34  ;;  %v857_v37 = vpop.f32.mrb[9].mxu1 }
 0x443   :  { %v858_v40 = vadd.f32 %v857_v37, %v775_v34 }
 0x444   :  { %v866_v39 = vmax.f32 %v856_v36, 0.0 }
 0x445   :  { %v861_v41 = vpop.f32.mrb[10].mxu1  ;;  %v867_v45 = vmax.f32 %v858_v40, 0.0 }
 0x446   :  { %v862_v42 = vadd.f32 %v861_v41, %v780_v38  ;;  %v863_v43 = vpop.f32.mrb[11].mxu1  ;;  %870 = vrot.lane.b32.xlu1 %v866_v39, %s1198_s14 }
 0x447   :  { %v864_v44 = vadd.f32 %v863_v43, %v780_v38 }
 0x448   :  { %v868_v7 = vmax.f32 %v862_v42, 0.0 }
 0x449   :  { %v869_v46 = vmax.f32 %v864_v44, 0.0 }
 0x44a   :  { %v1148_v47 = vpack.c.bf16 %v868_v7, %v866_v39  ;;  %872 = vrot.lane.b32.xlu0 %v868_v7, %s1198_s14  ;;  %874 = vrot.lane.b32.xlu1 %v867_v45, %s1198_s14 }
 0x44b   :  { %v1146_v48 = vpack.c.bf16 %v869_v46, %v867_v45 }
 0x44e   :  { %876 = vrot.lane.b32.xlu0 %v869_v46, %s1198_s14  ;;  %886 = vrot.lane.b32.xlu1 %v866_v39, %s1199_s22 }
 0x452   :  { %888 = vrot.lane.b32.xlu0 %v868_v7, %s1199_s22  ;;  %890 = vrot.lane.b32.xlu1 %v867_v45, %s1199_s22 }
 0x456   :  { %892 = vrot.lane.b32.xlu0 %v869_v46, %s1199_s22  ;;  %906 = vperm.xlu1 %1168, %v903_v49   ;;  %s1018_s22 = sshll.u32 %s1203_s13, 4  ;;  %s1019_s22 = int_to_ptr.vmem [resolvable:$true] %s1018_s22 }
 0x457   :  { %s1173_s4 = scalar_lea.vmem %s1019_s22, 32  ;;  %p1178_p1 = scmp.lt.s32.totalorder %s1019_s22, %s1019_s22 }
 0x458   :  { %p1174_p0 = scmp.ne.s32.totalorder %s1019_s22, %s1173_s4  ;;  %p1179_p2 = scmp.lt.s32.totalorder %s1173_s4, %s1173_s4 }
 0x45a   :  { %p1180_p3 = por %p1179_p2, %p1178_p1 }
 0x45c   :  { %p1181_p4 = pnand %p1180_p3, %p1174_p0 }
 0x4b8   :  { %v871_v50 = vpop.permute.xlu1 %870 }
 0x4bc   :  { %v875_v51 = vpop.permute.xlu1 %874  ;;  %v873_v52 = vpop.permute.xlu0 %872 }
 0x4bd   :  { %v878_v11 = vsel %vm78_vm0, %v871_v50, %v875_v51  ;;  %v880_v55 = vsel %vm78_vm0, %v875_v51, %v871_v50 }
 0x4be   :  { %v882_v62 = vmul.f32 %v880_v55, %v1336_v21  ;;  %v883_v0 = vmul.f32 %v878_v11, %v1338_v22 }
 0x4c0   :  { %v887_v56 = vpop.permute.xlu1 %886  ;;  %v877_v57 = vpop.permute.xlu0 %876 }
 0x4c1   :  { %v879_v60 = vsel %vm78_vm0, %v873_v52, %v877_v57  ;;  %v881_v61 = vsel %vm78_vm0, %v877_v57, %v873_v52 }
 0x4c2   :  { %v884_v10 = vmul.f32 %v881_v61, %v1336_v21  ;;  %v885_v12 = vmul.f32 %v879_v60, %v1338_v22 }
 0x4c4   :  { %v1144_v13 = vpack.c.bf16 %v884_v10, %v882_v62  ;;  %v891_v18 = vpop.permute.xlu1 %890  ;;  %v889_v6 = vpop.permute.xlu0 %888  ;;  %v1142_v9 = vpack.c.bf16 %v885_v12, %v883_v0 }
 0x4c5   :  { %v894_v17 = vsel %vm98_vm1, %v887_v56, %v891_v18  ;;  %v896_v59 = vsel %vm98_vm1, %v891_v18, %v887_v56 }
 0x4c6   :  { %1143 = vmatprep.subr.bf16.mxu0 %v1142_v9  ;;  %v898_v22 = vmul.f32 %v894_v17, %v1341_v23  ;;  %v899_v3 = vmul.f32 %v896_v59, %v1343_v24 }
 0x4c7   :  { %1145 = vmatpush1.bf16.msra.mxu0 %v1144_v13 }
 0x4c8   :  { %1147 = vmatprep.subr.bf16.mxu0 %v1146_v48  ;;  %v893_v8 = vpop.permute.xlu0 %892 }
 0x4c9   :  { %v895_v63 = vsel %vm98_vm1, %v889_v6, %v893_v8  ;;  %v897_v21 = vsel %vm98_vm1, %v893_v8, %v889_v6 }
 0x4ca   :  { %v900_v5 = vmul.f32 %v895_v63, %v1341_v23  ;;  %v901_v20 = vmul.f32 %v897_v21, %v1343_v24  ;;  %v1202_v24 = vmov 1966171168  }
 0x4cb   :  { %1149 = vmatpush1.bf16.msra.mxu0 %v1148_v47  ;;  %v993_v28 = vunpack.c.l.s4 %v1202_v24 }
 0x4cc   :  { %v1152_v25 = vpack.c.bf16 %v900_v5, %v898_v22  ;;  %v1150_v26 = vpack.c.bf16 %v901_v20, %v899_v3 }
 0x4cd   :  { %v994_v15 = vunpack.c.0.s8 %v993_v28 }
 0x4ce   :  { %1151 = vmatprep.subr.bf16.mxu0 %v1150_v26 }
 0x4cf   :  { %1153 = vmatpush1.bf16.msra.mxu0 %v1152_v25  ;;  %v997_v14 = vsub.s32 %v994_v15, %v1288_v2 }
 0x4d2   :  { %1045 = vmatmul.mubr.msk.f32.vlgmr.msra.gmra.mrb[12].mxu0 %vm295_vm7, %v902_v27 }
 0x4d5   :  { %v907_v16 = vpop.permute.xlu1 %906 }
 0x4d6   :  { %v912_v53 = vrot.slane %v907_v16, %v1294_v4 }
 0x5a5   :  { %v982_v54 = vpop.f32.mrb[12].mxu0 }
 0x5a6   :  { %v983_v58 = vadd.f32 %v982_v54, %v912_v53  ;;  %v984_v29 = vpop.f32.mrb[13].mxu0 }
 0x5a7   :  { %v985_v23 = vadd.f32 %v984_v29, %v912_v53 }
 0x5a8   :  { %1169 = vtanh.f32 %v983_v58 }
 0x5a9   :  { %1171 = vtanh.f32 %v985_v23 }
 0x5b2   :  { %v1170_v19 = vpop.eup %1169 }
 0x5b3   :  { %v1172_v30 = vpop.eup %1171 }
 0x5b4   :  { %v991_v31 = vcombine.low %v1170_v19, %v1172_v30 }
 0x5b6   :  { %v998_v32 = vrot.slane %v991_v31, %v997_v14 }
 0x5b8   :  { %v1005_v4 = vrot.slane %v998_v32, %v997_v14 }
 0x5ba   :  { %1011 = vst.msk [vmem:[#allocation3] sm:$0x3] %vm1009_vm9, %v1005_v4 }
 0x5bb   :  { %1184 = shalt.err (!%p1181_p4)
}
 0x5bc   :  { %s1185_s19 = scalar_lea.hbm %s1708_s15, 32 }
 0x5bd   :  { %p1186_p5 = scmp.ne.s32.totalorder %s1708_s15, %s1185_s19  ;;  %p1189_p6 = scmp.lt.u32.totalorder %s1185_s19, %s1708_s15 }
 0x5bf   :  { %p1191_p7 = pnand %p1189_p6, %p1186_p5 }
 0x5c1   :  { %1194 = shalt.err (!%p1191_p7)
}
 0x5c2   :  { %1021 = dma.vmem_to_hbm [thread:$0]  %s1019_s22, 32, %s1708_s15, [#allocation4]  }
 0x5c3   :  { %1195 = dma.done.wait [#allocation4], 32  }
 0x5c4   :  { %1196 = vsyncadd [#allocation4], 4294967264 }
 0x5c5   :  { %1025 = vsyncpa [#allocation4], 1 }

</bundles_post_ra>
